<compile_context>
chip_gen: v5e
topology: v5e:2x2
jax: 0.10.0
libtpu: 0.0.40
codegen_flags: <defaults>
</compile_context>

<pallas_src>
import jax
import jax.numpy as jnp
from jax.experimental import pallas as pl
from jax.experimental.pallas import tpu as pltpu


def _round_up(x, m):
    return ((x + m - 1) // m) * m


def _linear_kernel(x_ref, w_ref, b_ref, o_ref):
    # x_ref: (tile_n, in_ch)    VMEM
    # w_ref: (in_ch, tile_c)    VMEM  (W^T tile, transposed once in wrapper)
    # b_ref: (1, tile_c)        VMEM
    # o_ref: (tile_n, tile_c)   VMEM
    acc = jnp.dot(x_ref[...], w_ref[...], preferred_element_type=jnp.float32)
    o_ref[...] = (acc + b_ref[...]).astype(o_ref.dtype)


def _vmem_capacity_bytes():
    try:
        return int(pltpu.get_tpu_info().vmem_capacity_bytes)
    except Exception:
        return 64 << 20  # conservative default (v7x per-TC VMEM)


def linear_classifier(x, weight, bias, *, tile_n=None, tile_c=None,
                      vmem_budget_bytes=None):
    """y = x @ weight.T + bias  (PyTorch nn.Linear semantics) via Pallas.

    x:      [N, in_channels]              float32
    weight: [out_channels, in_channels]   (nn.Linear layout)
    bias:   [out_channels]
    returns [N, out_channels]             float32
    """
    n, in_ch = x.shape
    out_ch = weight.shape[0]
    itemsize = 4  # f32

    # ---- generation-aware VMEM budget (v5e/v6e: 128 MiB, v7x: 64 MiB) ------
    capacity = _vmem_capacity_bytes()
    if vmem_budget_bytes is None:
        vmem_budget_bytes = min(int(0.75 * capacity), 96 << 20)

    # ---- output lane-padding policy -----------------------------------------
    # Lane-dense (128-multiple) stores are preferred, but padding a tiny head
    # (16 -> 128) inflates output HBM traffic 8x.  Pad only when the inflation
    # stays <= 2x; otherwise keep out_ch as a full-extent (masked-store) block.
    out_ch_p128 = _round_up(out_ch, 128)
    if out_ch % 128 == 0:
        out_ch_p = out_ch
    elif out_ch_p128 <= 2 * out_ch:
        out_ch_p = out_ch_p128
    else:
        out_ch_p = out_ch

    # ---- one-time host-side prep: transpose W -> (in_ch, out_ch_p) ----------
    wt = weight.T
    if out_ch_p != out_ch:
        wt = jnp.pad(wt, ((0, 0), (0, out_ch_p - out_ch)))
        bias = jnp.pad(bias, (0, out_ch_p - out_ch))
    b2 = bias.reshape(1, out_ch_p)

    # ---- tile_c: tile out_ch when the double-buffered W panel blows VMEM ----
    if tile_c is None:
        tile_c = out_ch_p
        if out_ch_p % 128 == 0:
            while (tile_c > 128
                   and 2 * in_ch * tile_c * itemsize > vmem_budget_bytes // 2):
                tile_c = max(128, _round_up(tile_c // 2, 128))
    tile_c = min(int(tile_c), out_ch_p)
    # TODO(synk): if in_ch alone is too large for a resident K panel, add a
    # K-reduction grid axis with an f32 accumulator scratch (pl.when init/fin).

    # ---- tile_n: grow toward budget; count double buffers on every block ----
    def vmem_estimate(tn, tc):
        return (2 * tn * in_ch * itemsize       # x block (double-buffered)
                + 2 * in_ch * tc * itemsize     # W^T block (double-buffered)
                + 2 * tc * itemsize             # bias block
                + 2 * tn * tc * itemsize)       # out block (double-buffered)

    if tile_n is None:
        tile_n = min(_round_up(n, 8), 2048)
    tile_n = max(8, _round_up(int(tile_n), 8))
    while tile_n > 8 and vmem_estimate(tile_n, tile_c) > vmem_budget_bytes:
        tile_n = max(8, _round_up(tile_n // 2, 8))

    # v7x has 2 TensorCores: give the parallel axes >=2 steps when there is
    # enough work to be worth splitting (skip for tiny N on 1-TC chips).
    if pl.cdiv(n, tile_n) == 1 and pl.cdiv(out_ch_p, tile_c) == 1 and n >= 256:
        tile_n = max(8, _round_up((n + 1) // 2, 8))

    grid = (pl.cdiv(n, tile_n), pl.cdiv(out_ch_p, tile_c))

    flops = 2 * n * in_ch * out_ch
    bytes_accessed = (n * in_ch + in_ch * out_ch_p + out_ch_p
                      + n * out_ch_p) * itemsize
    vmem_limit = int(min(max(vmem_estimate(tile_n, tile_c) + (8 << 20), 16 << 20),
                         int(0.9 * capacity)))

    # No row padding of x: pl.cdiv grid + partial last block.  OOB input rows
    # only feed output rows that are dropped, so no NaN/Inf can leak.
    y = pl.pallas_call(
        _linear_kernel,
        out_shape=jax.ShapeDtypeStruct((n, out_ch_p), jnp.float32),
        grid_spec=pltpu.PrefetchScalarGridSpec(
            num_scalar_prefetch=0,
            grid=grid,
            in_specs=[
                pl.BlockSpec((tile_n, in_ch), lambda i, j: (i, 0)),   # x: invariant over j
                pl.BlockSpec((in_ch, tile_c), lambda i, j: (0, j)),   # W^T tile
                pl.BlockSpec((1, tile_c), lambda i, j: (0, j)),       # bias tile
            ],
            out_specs=pl.BlockSpec((tile_n, tile_c), lambda i, j: (i, j)),
        ),
        compiler_params=pltpu.CompilerParams(
            dimension_semantics=("parallel", "parallel"),
            vmem_limit_bytes=vmem_limit,
        ),
        cost_estimate=pl.CostEstimate(
            flops=flops, transcendentals=0, bytes_accessed=bytes_accessed),
    )(x, wt, b2)

    # Slice away lane padding (no row padding was introduced).
    if out_ch_p != out_ch:
        y = y[:, :out_ch]
    return y


if __name__ == "__main__":
    key = jax.random.PRNGKey(0)
    k_x, k_w, k_b = jax.random.split(key, 3)

    # Small shapes consistent with the module: batch of node embeddings.
    N = 8
    in_channels = 32
    out_channels = 16

    x = jax.random.normal(k_x, (N, in_channels), dtype=jnp.float32)

    # Deterministic parameter init (mimic nn.Linear's uniform(-1/sqrt(in), ...)).
    bound = 1.0 / (in_channels ** 0.5)
    weight = jax.random.uniform(
        k_w, (out_channels, in_channels), dtype=jnp.float32,
        minval=-bound, maxval=bound)
    bias = jax.random.uniform(
        k_b, (out_channels,), dtype=jnp.float32, minval=-bound, maxval=bound)

    y = linear_classifier(x, weight, bias)
    y = jax.block_until_ready(y)

    # Reference check (plain JAX).
    y_ref = x @ weight.T + bias
    assert y.shape == (N, out_channels)
    assert jnp.allclose(y, y_ref, atol=1e-5, rtol=1e-5), "mismatch vs reference"

    print("KERNEL_OK")
</pallas_src>

<mosaic_0001>
module attributes {stable_mosaic.version = 11 : i64} {
  func.func @_linear_kernel(%arg0: i32, %arg1: i32, %arg2: memref<8x32xf32, #tpu.memory_space<vmem>>, %arg3: memref<32x16xf32, #tpu.memory_space<vmem>>, %arg4: memref<1x16xf32, #tpu.memory_space<vmem>>, %arg5: memref<8x16xf32, #tpu.memory_space<vmem>>) attributes {dimension_semantics = [#tpu.dimension_semantics<parallel>, #tpu.dimension_semantics<parallel>], iteration_bounds = array<i64: 1, 1>, scalar_prefetch = 0 : i64, scratch_operands = 0 : i64, tpu.core_type = #tpu.core_type<tc>, window_params = [{transform_indices = @transform_0, window_bounds = array<i64: 8, 32>}, {transform_indices = @transform_1, window_bounds = array<i64: 32, 16>}, {transform_indices = @transform_2, window_bounds = array<i64: 1, 16>}, {transform_indices = @transform_3, window_bounds = array<i64: 8, 16>}]} {
    %c0 = arith.constant 0 : index
    %c0_0 = arith.constant 0 : index
    %0 = vector.load %arg2[%c0, %c0_0] : memref<8x32xf32, #tpu.memory_space<vmem>>, vector<8x32xf32>
    %c0_1 = arith.constant 0 : index
    %c0_2 = arith.constant 0 : index
    %1 = vector.load %arg3[%c0_1, %c0_2] : memref<32x16xf32, #tpu.memory_space<vmem>>, vector<32x16xf32>
    %cst = arith.constant dense<0.000000e+00> : vector<8x16xf32>
    %2 = tpu.matmul %0, %1, %cst {dimension_numbers = #tpu.dot_dimension_numbers<[1], [0], [0], [1], [0, 0, 1, 1], [], []>} : vector<8x32xf32>, vector<32x16xf32>, vector<8x16xf32> -> vector<8x16xf32>
    %c0_3 = arith.constant 0 : index
    %c0_4 = arith.constant 0 : index
    %3 = vector.load %arg4[%c0_3, %c0_4] : memref<1x16xf32, #tpu.memory_space<vmem>>, vector<1x16xf32>
    %4 = vector.broadcast %3 : vector<1x16xf32> to vector<8x16xf32>
    %5 = arith.addf %2, %4 : vector<8x16xf32>
    %c0_5 = arith.constant 0 : index
    %c0_6 = arith.constant 0 : index
    %6 = vector.load %arg5[%c0_5, %c0_6] : memref<8x16xf32, #tpu.memory_space<vmem>>, vector<8x16xf32>
    tpu.vector_store %arg5[%c0_5, %c0_6], %5 {strides = array<i32>} : memref<8x16xf32, #tpu.memory_space<vmem>>, vector<8x16xf32>,
    return
  }
  func.func @transform_0(%arg0: i32, %arg1: i32) -> (i32, i32) {
    %c0_i32 = arith.constant 0 : i32
    %c0_i32_0 = arith.constant 0 : i32
    return %arg0, %c0_i32 : i32, i32
  }
  func.func @transform_1(%arg0: i32, %arg1: i32) -> (i32, i32) {
    %c0_i32 = arith.constant 0 : i32
    %c0_i32_0 = arith.constant 0 : i32
    return %c0_i32, %arg1 : i32, i32
  }
  func.func @transform_2(%arg0: i32, %arg1: i32) -> (i32, i32) {
    %c0_i32 = arith.constant 0 : i32
    %c0_i32_0 = arith.constant 0 : i32
    return %c0_i32, %arg1 : i32, i32
  }
  func.func @transform_3(%arg0: i32, %arg1: i32) -> (i32, i32) {
    %c0_i32 = arith.constant 0 : i32
    return %arg0, %arg1 : i32, i32
  }
}

</mosaic_0001>

<bundles_post_ra>
// kernel: tpu_custom_call.1
= control target key start
LH: loop header
LB: loop body
LE: loop exit
PB: predicated region body
PF: predicated region fallthrough
CT: control target
= control target key end

     0   :  { %s137_s0 = inlined_call_operand.vmem [shape: f32[8,32], index: 0, kind: input, shape index: {}]   ;;  %s138_s1 = inlined_call_operand.vmem [shape: f32[32,16], index: 1, kind: input, shape index: {}]   ;;  %s139_s2 = inlined_call_operand.vmem [shape: f32[1,16], index: 2, kind: input, shape index: {}]   ;;  %s140_s3 = inlined_call_operand.hbm [shape: f32[8,16], index: 3, kind: output, shape index: {}]  }
   0x1   :  { %v19_v0 = vld [vmem:[%s138_s1 + $0x18] sm:$0xff]  ;;  %v18_v1 = vld [vmem:[%s138_s1 + $0x10] sm:$0xff]  ;;  %v17_v2 = vld [vmem:[%s138_s1 + $0x8] sm:$0xff] }
   0x2   :  { %40 = vmatpush.msra.mxu0 %v19_v0 }
   0x3   :  { %8 = vsyncpa [#allocation3], 0  ;;  %v16_v3 = vld [vmem:[%s138_s1] sm:$0xff]  ;;  %vm24_vm0 = vcmask 261120   ;;  %s95_s24 = smov [#allocation2]   ;;  %s57_s28 = sshll.u32 %s140_s3, 4  ;;  %s58_s28 = int_to_ptr.hbm [resolvable:$true] %s57_s28 }
   0x4   :  { %41 = vmatpush.msra.mxu0 %v18_v1  ;;  %v15_v4 = vld [vmem:[%s137_s0] sm:$0xff]  ;;  %s55_s25 = sshll.u32 %s95_s24, 4  ;;  %vm48_vm1 = vcmask 130048   ;;  %s56_s25 = int_to_ptr.vmem [resolvable:$true] %s55_s25 }
   0x5   :  { %v68_v5 = vld [vmem:[%s139_s2] ss:$0 sm:$0xff] }
   0x6   :  { %42 = vmatpush.msra.mxu0 %v17_v2 }
   0x8   :  { %43 = vmatpush.msra.mxu0 %v16_v3 }
   0x9   :  { %66 = vmatmul.msk.f32.vlgmr.msra.gmra.mxu0 %vm24_vm0, %v15_v4 }
  0x86   :  { %v45_v6 = vpop.f32.mrf.mxu0 }
  0x87   :  { %v46_v7 = vadd.f32 %v68_v5, %v45_v6 }
  0x89   :  { %49 = vst.msk [vmem:[#allocation2] sm:$0xff] %vm48_vm1, %v46_v7 }
  0x8a   :  { %60 = dma.vmem_to_hbm [thread:$0]  %s56_s25, 128, %s58_s28, [#allocation3]  }
  0x8b   :  { %93 = dma.done.wait [#allocation3], 128  }
  0x8c   :  { %94 = vsyncadd [#allocation3], 4294967168 }
  0x8d   :  { %65 = vsyncpa [#allocation3], 1 }

</bundles_post_ra>
